<compile_context>
chip_gen: v6e
topology: v6e:2x2x1
jax: 0.10.0
libtpu: 0.0.40
codegen_flags: <defaults>
</compile_context>

<pallas_src>
import jax
import jax.numpy as jnp
from jax.experimental import pallas as pl
from jax.experimental.pallas import tpu as pltpu

ALPHA = 2.0 / 5.0
BETA = 4.0 / 5.0


def _round_up(x, m):
    return ((x + m - 1) // m) * m


# ----------------------------------- kernel -----------------------------------

def gru_flow_kernel(h_ref, t_ref, e_ref, wrz_ref, wh_ref, vec_ref, o_ref, h_sc):
    """One GRUFlowBlock layer applied to one (TM, PD) packed-row tile.

    Grid = (row_tiles, n_layers); the layer axis is the inner "arbitrary" axis,
    so only ~2 layers of weights are resident (streamed / double-buffered).

    h_ref  : (TM, PD)        hidden rows (read once, at layer 0)
    t_ref  : (TM, pack)      per-row time values, f32 (NOT pre-densified)
    e_ref  : (pack, PD)      0/1 segment-expansion matrix for t
    wrz_ref: (1, PD, 2*PD)   bf16 fused [Wr | Wz] for this layer
    wh_ref : (1, PD, PD)     bf16 Wh for this layer
    vec_ref: (1, 8, PD)      f32 rows [wr_t, wz_t, wh_t, b_r, b_z, b_h, tscale, pad]
    o_ref  : (TM, PD)        output rows (written at the last layer only)
    h_sc   : (TM, PD) f32    hidden-state carry across the layer grid axis
    """
    layer = pl.program_id(1)
    n_layers = pl.num_programs(1)

    @pl.when(layer == 0)
    def _():
        h_sc[...] = h_ref[...].astype(jnp.float32)

    h = h_sc[...]                                        # (TM, PD) f32
    pd = h.shape[-1]

    # Expand t to PD lanes in-kernel (MXU/VPU have slack) instead of streaming
    # a dense (TM, PD) t from HBM.
    t_small = t_ref[...].astype(jnp.float32)             # (TM, pack)
    if e_ref.shape[0] == 1:
        t = jnp.broadcast_to(t_small, h.shape)
    else:
        t = jnp.dot(t_small, e_ref[...], preferred_element_type=jnp.float32)

    wrz = wrz_ref[0]                                     # (PD, 2PD) bf16
    wh = wh_ref[0]                                       # (PD, PD)  bf16
    v = vec_ref[0]                                       # (8, PD)   f32
    wr_t, wz_t, wh_t = v[0:1], v[1:2], v[2:3]
    b_r, b_z, b_h, tscale = v[3:4], v[4:5], v[5:6], v[6:7]

    # Fused r/z pre-activations: one MXU pass over [Wr | Wz], bf16 operands,
    # f32 accumulation.
    prz = jnp.dot(h.astype(jnp.bfloat16), wrz,
                  preferred_element_type=jnp.float32)    # (TM, 2PD)
    # sigmoid(x) = 0.5*(1 + tanh(0.5*x))  -> a single EUP tanh per gate.
    # r = beta * sigmoid(lin_hr([h, t]));  z = alpha * sigmoid(lin_hz([h, t]))
    r = (0.5 * BETA) * (1.0 + jnp.tanh(0.5 * (prz[:, :pd] + t * wr_t + b_r)))
    z = (0.5 * ALPHA) * (1.0 + jnp.tanh(0.5 * (prz[:, pd:] + t * wz_t + b_z)))
    # u = tanh(lin_hh([r * h, t]))
    u = jnp.tanh(jnp.dot((r * h).astype(jnp.bfloat16), wh,
                         preferred_element_type=jnp.float32)
                 + t * wh_t + b_h)
    # h <- h + time_net(t) * residual ;  time_net = TimeTanh: tanh(scale * t)
    h_new = h + jnp.tanh(t * tscale) * (z * (u - h))
    h_sc[...] = h_new

    @pl.when(layer == n_layers - 1)
    def _():
        o_ref[...] = h_new.astype(o_ref.dtype)


# ------------------------------- kernel wrapper --------------------------------

def _pack_kernel_params(params, pack, Dp):
    """Build the kernel weight slabs.

    Returns:
      wrz : (L, PD, 2*PD) bf16  fused [Wr | Wz] (block-diag if pack > 1, zero-padded if Dp > D)
      wh  : (L, PD, PD)   bf16  Wh
      vecs: (L, 8, PD)    f32   [wr_t, wz_t, wh_t, b_r, b_z, b_h, tscale, pad]
    """
    Wr, Wz, Wh, wt, b, ts = params
    L, D, _ = Wr.shape
    if Dp != D:
        # Zero padding keeps real lanes exact and (with zero tscale padding)
        # keeps padded lanes at exactly 0 through every layer.
        pw = Dp - D
        padm = lambda w: jnp.pad(w, ((0, 0), (0, pw), (0, pw)))
        Wr, Wz, Wh = padm(Wr), padm(Wz), padm(Wh)
        wt = jnp.pad(wt, ((0, 0), (0, 0), (0, pw)))
        b = jnp.pad(b, ((0, 0), (0, 0), (0, pw)))
        ts = jnp.pad(ts, ((0, 0), (0, pw)))
    if pack > 1:
        eye = jnp.eye(pack, dtype=jnp.float32)
        bdiag = jax.vmap(lambda m: jnp.kron(eye, m))      # (Dp,Dp) -> (PD,PD)
        Wr, Wz, Wh = bdiag(Wr), bdiag(Wz), bdiag(Wh)
        tile = lambda v: jnp.tile(v, (1, pack))           # (L,Dp) -> (L,PD)
    else:
        tile = lambda v: v
    wrz = jnp.concatenate([Wr, Wz], axis=-1).astype(jnp.bfloat16)
    wh = Wh.astype(jnp.bfloat16)
    PD = pack * Dp
    vecs = jnp.stack(
        [tile(wt[:, 0]), tile(wt[:, 1]), tile(wt[:, 2]),
         tile(b[:, 0]), tile(b[:, 1]), tile(b[:, 2]),
         tile(ts), jnp.zeros((L, PD), jnp.float32)],
        axis=1)
    return wrz, wh, vecs


def _device_vmem_budget():
    """Per-core VMEM budget derived from the actual device (8 MiB headroom)."""
    try:
        cap = int(pltpu.get_tpu_info().vmem_capacity_bytes)
    except Exception:
        cap = 64 << 20   # conservative fallback = v7x physical VMEM per core
    return max(32 << 20, cap - (8 << 20))


def _vmem_need_bytes(tm, PD, t_last, pack, x_itemsize):
    """Estimate of resident VMEM for one grid step (streamed-layer design)."""
    per_layer_w = PD * (2 * PD) * 2 + PD * PD * 2 + 8 * PD * 4   # bf16+bf16+f32
    weights = 2 * per_layer_w                                    # 2 layers in flight
    tiles = 2 * (2 * tm * PD * x_itemsize + tm * t_last * 4)     # h + out + t, x2 buffers
    scratch = tm * PD * 4                                        # h carry
    temps = 8 * tm * PD * 4                                      # prz/r/z/u/t f32 live values
    return weights + tiles + scratch + temps + 2 * pack * PD * 4


def gru_flow_forward(x, t, params, *, tile_m=512):
    """x: (B, Sx, D), t: (B, S, 1). Returns (B, S, D). Matches GRUFlow.forward."""
    if x.shape[-2] != t.shape[-2]:
        # torch repeat_interleave along dim=-2 (x.shape[-2] == 1 in GRUFlow use)
        x = jnp.repeat(x, t.shape[-2], axis=-2)
    B, S, D = x.shape
    M = B * S
    L = params[0].shape[0]

    # Lane geometry: pack `pack` rows side by side for small D so the lane axis
    # is 128-dense; otherwise pad D to the next 128 multiple (lane-aligned
    # output stores and 128-aligned prz split).
    if D < 128 and 128 % D == 0:
        pack, Dp = 128 // D, D
    else:
        pack, Dp = 1, _round_up(D, 128)
    PD = pack * Dp
    t_last = pack

    wrz, wh, vecs = _pack_kernel_params(params, pack, Dp)
    per_layer_w_bytes = PD * (2 * PD) * 2 + PD * PD * 2 + 8 * PD * 4

    # Generation-aware tile sizing: largest tm whose tiles + 2 streamed layers
    # of weights + f32 temporaries fit the device VMEM budget.
    x_itemsize = jnp.dtype(x.dtype).itemsize
    vmem_budget = _device_vmem_budget()
    Mp = pl.cdiv(M, pack)                                 # packed rows
    tm = min(_round_up(max(tile_m, 8), 8), _round_up(Mp, 8))
    while tm > 8 and _vmem_need_bytes(tm, PD, t_last, pack, x_itemsize) > vmem_budget:
        tm = _round_up(max(tm // 2, 8), 8)
    Mp_pad = _round_up(Mp, tm)
    M_pad = Mp_pad * pack
    pad = M_pad - M

    h = x.reshape(M, D)
    tt = t.reshape(M, 1).astype(jnp.float32)              # keep t f32 end-to-end
    if Dp != D:
        h = jnp.pad(h, ((0, 0), (0, Dp - D)))
    if pad:
        h = jnp.concatenate([h, jnp.zeros((pad, Dp), h.dtype)], axis=0)
        tt = jnp.concatenate([tt, jnp.zeros((pad, 1), jnp.float32)], axis=0)
    h_in = h.reshape(Mp_pad, PD)
    t_in = tt.reshape(Mp_pad, pack)                       # narrow t (no dense HBM t)

    if pack > 1:
        # 0/1 segment-expansion matrix: t_full = t_small @ expand.
        expand = jnp.kron(jnp.eye(pack, dtype=jnp.float32),
                          jnp.ones((1, Dp), jnp.float32))          # (pack, PD)
    else:
        expand = jnp.ones((1, PD), jnp.float32)

    vmem_limit = int(min(
        vmem_budget,
        max(32 << 20,
            int(1.25 * _vmem_need_bytes(tm, PD, t_last, pack, x_itemsize)))))

    n_row_tiles = Mp_pad // tm
    cost = pl.CostEstimate(
        flops=int(6 * Mp_pad * L * PD * PD),
        transcendentals=int(4 * Mp_pad * PD * L),
        bytes_accessed=int(2 * Mp_pad * PD * x_itemsize
                           + Mp_pad * t_last * 4
                           + n_row_tiles * L * per_layer_w_bytes),
    )

    out = pl.pallas_call(
        gru_flow_kernel,
        out_shape=jax.ShapeDtypeStruct((Mp_pad, PD), x.dtype),
        grid_spec=pltpu.PrefetchScalarGridSpec(
            num_scalar_prefetch=0,
            grid=(n_row_tiles, L),
            in_specs=[
                pl.BlockSpec((tm, PD), lambda i, l: (i, 0)),        # h rows
                pl.BlockSpec((tm, t_last), lambda i, l: (i, 0)),    # t rows (narrow)
                pl.BlockSpec((pack, PD), lambda i, l: (0, 0)),      # t expansion (grid-invariant)
                # Per-layer weight streaming: only ~2 layers resident; next
                # layer's weight DMA overlaps this layer's compute.
                pl.BlockSpec((1, PD, 2 * PD), lambda i, l: (l, 0, 0)),   # [Wr|Wz]
                pl.BlockSpec((1, PD, PD), lambda i, l: (l, 0, 0)),       # Wh
                pl.BlockSpec((1, 8, PD), lambda i, l: (l, 0, 0)),        # vectors
            ],
            out_specs=pl.BlockSpec((tm, PD), lambda i, l: (i, 0)),
            scratch_shapes=[pltpu.VMEM((tm, PD), jnp.float32)],     # h carry across layers
        ),
        compiler_params=pltpu.CompilerParams(
            dimension_semantics=("parallel", "arbitrary"),
            vmem_limit_bytes=vmem_limit),
        input_output_aliases={0: 0},           # h_in aliased to the output buffer
        cost_estimate=cost,
    )(h_in, t_in, expand, wrz, wh, vecs)

    out = out.reshape(Mp_pad * pack, Dp)[:M, :D]
    return out.reshape(B, S, D)


# ----------------------------- parameter setup (glue) -----------------------------

def spectral_normalize(w, u0, n_iter=5, eps=1e-12):
    """Mimic torch.nn.utils.spectral_norm normalization via power iteration.

    NOTE: torch keeps a persistent `u` buffer updated once per forward; here we
    run 5 fresh iterations from u0 at setup time, so sigma can differ slightly
    from a trained PyTorch checkpoint (fine for synthetic params).
    """
    u = u0 / (jnp.linalg.norm(u0) + eps)
    v = None
    for _ in range(n_iter):
        v = w.T @ u
        v = v / (jnp.linalg.norm(v) + eps)
        u = w @ v
        u = u / (jnp.linalg.norm(u) + eps)
    sigma = u @ (w @ v)
    return w / sigma


def init_gru_flow_params(key, dim, n_layers):
    """Deterministic synthetic parameters matching GRUFlowBlock shapes.

    Returns (Wr, Wz, Wh, wt, b, ts):
      Wr/Wz/Wh: (L, D, D)  spectral-normalized W[:, :D].T (so h @ W works)
      wt      : (L, 3, D)  t-columns W[:, D] for gates r, z, h
      b       : (L, 3, D)  biases for gates r, z, h
      ts      : (L, D)     TimeTanh scale
    """
    Wr_l, Wz_l, Wh_l, wt_l, b_l, ts_l = [], [], [], [], [], []
    bound = 1.0 / jnp.sqrt(dim + 1.0)
    for _ in range(n_layers):
        keys = jax.random.split(key, 11)
        key = keys[0]
        mats, tcols, biases = [], [], []
        for g in range(3):  # r, z, h gates
            w = jax.random.uniform(keys[1 + g], (dim, dim + 1),
                                   minval=-bound, maxval=bound, dtype=jnp.float32)
            u0 = jax.random.normal(keys[4 + g], (dim,), dtype=jnp.float32)
            bb = jax.random.uniform(keys[7 + g], (dim,),
                                    minval=-bound, maxval=bound, dtype=jnp.float32)
            w = spectral_normalize(w, u0, n_iter=5)
            mats.append(w[:, :dim].T)
            tcols.append(w[:, dim])
            biases.append(bb)
        tscale = jax.random.normal(keys[10], (dim,), dtype=jnp.float32)
        Wr_l.append(mats[0]); Wz_l.append(mats[1]); Wh_l.append(mats[2])
        wt_l.append(jnp.stack(tcols)); b_l.append(jnp.stack(biases)); ts_l.append(tscale)
    return (jnp.stack(Wr_l), jnp.stack(Wz_l), jnp.stack(Wh_l),
            jnp.stack(wt_l), jnp.stack(b_l), jnp.stack(ts_l))


# ----------------------------- pure-JAX reference -----------------------------

def reference_forward(x, t, params):
    Wr, Wz, Wh, wt, b, ts = params
    if x.shape[-2] != t.shape[-2]:
        x = jnp.repeat(x, t.shape[-2], axis=-2)
    h = x.astype(jnp.float32)
    tf = t.astype(jnp.float32)
    for l in range(Wr.shape[0]):
        r = BETA * jax.nn.sigmoid(h @ Wr[l] + tf * wt[l, 0] + b[l, 0])
        z = ALPHA * jax.nn.sigmoid(h @ Wz[l] + tf * wt[l, 1] + b[l, 1])
        u = jnp.tanh((r * h) @ Wh[l] + tf * wt[l, 2] + b[l, 2])
        h = h + jnp.tanh(tf * ts[l]) * (z * (u - h))
    return h


if __name__ == "__main__":
    dim = 32
    n_layers = 2
    B, S = 2, 8

    key = jax.random.PRNGKey(0)
    k_param, k_x, k_t = jax.random.split(key, 3)

    params = init_gru_flow_params(k_param, dim, n_layers)

    # x has a single "query" row per batch; t has S time points -> repeat_interleave path
    x = jax.random.normal(k_x, (B, 1, dim), dtype=jnp.float32)
    t = jax.random.uniform(k_t, (B, S, 1), dtype=jnp.float32)

    fwd = jax.jit(gru_flow_forward)
    out = fwd(x, t, params)
    out = jax.block_until_ready(out)

    ref = reference_forward(x, t, params)
    assert out.shape == (B, S, dim)
    # bf16 MXU operands (f32 accumulation) -> looser tolerance vs the f32 reference.
    assert jnp.allclose(out, ref, atol=5e-2, rtol=5e-2), \
        f"kernel/reference mismatch, max|diff|={float(jnp.max(jnp.abs(out - ref)))}"

    print("KERNEL_OK")
</pallas_src>

<mosaic_0001>
module attributes {stable_mosaic.version = 11 : i64} {
  func.func @gru_flow_kernel(%arg0: i32, %arg1: i32, %arg2: memref<8x128xf32, #tpu.memory_space<vmem>>, %arg3: memref<8x4xf32, #tpu.memory_space<vmem>>, %arg4: memref<4x128xf32, #tpu.memory_space<vmem>>, %arg5: memref<1x128x256xbf16, #tpu.memory_space<vmem>>, %arg6: memref<1x128x128xbf16, #tpu.memory_space<vmem>>, %arg7: memref<1x8x128xf32, #tpu.memory_space<vmem>>, %arg8: memref<8x128xf32, #tpu.memory_space<vmem>>, %arg9: memref<8x128xf32, #tpu.memory_space<vmem>>) attributes {dimension_semantics = [#tpu.dimension_semantics<parallel>, #tpu.dimension_semantics<arbitrary>], iteration_bounds = array<i64: 1, 2>, scalar_prefetch = 0 : i64, scratch_operands = 1 : i64, tpu.core_type = #tpu.core_type<tc>, window_params = [{transform_indices = @transform_0, window_bounds = array<i64: 8, 128>}, {transform_indices = @transform_1, window_bounds = array<i64: 8, 4>}, {pipeline_mode = #tpu.pipeline_mode<synchronous>, transform_indices = @transform_2, window_bounds = array<i64: 4, 128>}, {transform_indices = @transform_3, window_bounds = array<i64: 1, 128, 256>}, {transform_indices = @transform_4, window_bounds = array<i64: 1, 128, 128>}, {transform_indices = @transform_5, window_bounds = array<i64: 1, 8, 128>}, {transform_indices = @transform_6, window_bounds = array<i64: 8, 128>}]} {
    %c0_i32 = arith.constant 0 : i32
    %0 = arith.cmpi eq, %arg1, %c0_i32 : i32
    %1 = arith.extui %0 : i1 to i32
    %c0_i32_0 = arith.constant 0 : i32
    %2 = arith.cmpi ne, %1, %c0_i32_0 : i32
    scf.if %2 {
      %c0_26 = arith.constant 0 : index
      %c0_27 = arith.constant 0 : index
      %68 = vector.load %arg2[%c0_26, %c0_27] : memref<8x128xf32, #tpu.memory_space<vmem>>, vector<8x128xf32>
      %c0_28 = arith.constant 0 : index
      %c0_29 = arith.constant 0 : index
      %69 = vector.load %arg9[%c0_28, %c0_29] : memref<8x128xf32, #tpu.memory_space<vmem>>, vector<8x128xf32>
      tpu.vector_store %arg9[%c0_28, %c0_29], %68 {strides = array<i32>} : memref<8x128xf32, #tpu.memory_space<vmem>>, vector<8x128xf32>,
    } else {
    }
    %c0 = arith.constant 0 : index
    %c0_1 = arith.constant 0 : index
    %3 = vector.load %arg9[%c0, %c0_1] : memref<8x128xf32, #tpu.memory_space<vmem>>, vector<8x128xf32>
    %c0_2 = arith.constant 0 : index
    %c0_3 = arith.constant 0 : index
    %4 = vector.load %arg3[%c0_2, %c0_3] : memref<8x4xf32, #tpu.memory_space<vmem>>, vector<8x4xf32>
    %c0_4 = arith.constant 0 : index
    %c0_5 = arith.constant 0 : index
    %5 = vector.load %arg4[%c0_4, %c0_5] : memref<4x128xf32, #tpu.memory_space<vmem>>, vector<4x128xf32>
    %cst = arith.constant dense<0.000000e+00> : vector<8x128xf32>
    %6 = tpu.matmul %4, %5, %cst {dimension_numbers = #tpu.dot_dimension_numbers<[1], [0], [0], [1], [0, 0, 1, 1], [], []>} : vector<8x4xf32>, vector<4x128xf32>, vector<8x128xf32> -> vector<8x128xf32>
    %c0_6 = arith.constant 0 : index
    %c0_7 = arith.constant 0 : index
    %c0_8 = arith.constant 0 : index
    %7 = vector.load %arg5[%c0_6, %c0_7, %c0_8] : memref<1x128x256xbf16, #tpu.memory_space<vmem>>, vector<1x128x256xbf16>
    %8 = vector.shape_cast %7 : vector<1x128x256xbf16> to vector<128x256xbf16>
    %c0_9 = arith.constant 0 : index
    %c0_10 = arith.constant 0 : index
    %c0_11 = arith.constant 0 : index
    %9 = vector.load %arg6[%c0_9, %c0_10, %c0_11] : memref<1x128x128xbf16, #tpu.memory_space<vmem>>, vector<1x128x128xbf16>
    %10 = vector.shape_cast %9 : vector<1x128x128xbf16> to vector<128x128xbf16>
    %c0_12 = arith.constant 0 : index
    %c0_13 = arith.constant 0 : index
    %c0_14 = arith.constant 0 : index
    %11 = vector.load %arg7[%c0_12, %c0_13, %c0_14] : memref<1x8x128xf32, #tpu.memory_space<vmem>>, vector<1x8x128xf32>
    %12 = vector.shape_cast %11 : vector<1x8x128xf32> to vector<8x128xf32>
    %13 = vector.extract_strided_slice %12 {offsets = [0, 0], sizes = [1, 128], strides = [1, 1]} : vector<8x128xf32> to vector<1x128xf32>
    %14 = vector.extract_strided_slice %12 {offsets = [1, 0], sizes = [1, 128], strides = [1, 1]} : vector<8x128xf32> to vector<1x128xf32>
    %15 = vector.extract_strided_slice %12 {offsets = [2, 0], sizes = [1, 128], strides = [1, 1]} : vector<8x128xf32> to vector<1x128xf32>
    %16 = vector.extract_strided_slice %12 {offsets = [3, 0], sizes = [1, 128], strides = [1, 1]} : vector<8x128xf32> to vector<1x128xf32>
    %17 = vector.extract_strided_slice %12 {offsets = [4, 0], sizes = [1, 128], strides = [1, 1]} : vector<8x128xf32> to vector<1x128xf32>
    %18 = vector.extract_strided_slice %12 {offsets = [5, 0], sizes = [1, 128], strides = [1, 1]} : vector<8x128xf32> to vector<1x128xf32>
    %19 = vector.extract_strided_slice %12 {offsets = [6, 0], sizes = [1, 128], strides = [1, 1]} : vector<8x128xf32> to vector<1x128xf32>
    %20 = arith.truncf %3 : vector<8x128xf32> to vector<8x128xbf16>
    %cst_15 = arith.constant dense<0.000000e+00> : vector<8x256xf32>
    %21 = tpu.matmul %20, %8, %cst_15 {dimension_numbers = #tpu.dot_dimension_numbers<[1], [0], [0], [1], [0, 0, 1, 1], [], []>} : vector<8x128xbf16>, vector<128x256xbf16>, vector<8x256xf32> -> vector<8x256xf32>
    %22 = vector.extract_strided_slice %21 {offsets = [0, 0], sizes = [8, 128], strides = [1, 1]} : vector<8x256xf32> to vector<8x128xf32>
    %23 = vector.broadcast %13 : vector<1x128xf32> to vector<8x128xf32>
    %24 = arith.mulf %6, %23 : vector<8x128xf32>
    %25 = arith.addf %22, %24 : vector<8x128xf32>
    %26 = vector.broadcast %16 : vector<1x128xf32> to vector<8x128xf32>
    %27 = arith.addf %25, %26 : vector<8x128xf32>
    %cst_16 = arith.constant 5.000000e-01 : f32
    %28 = vector.broadcast %cst_16 : f32 to vector<8x128xf32>
    %29 = arith.mulf %28, %27 : vector<8x128xf32>
    %30 = math.tanh %29 : vector<8x128xf32>
    %cst_17 = arith.constant 1.000000e+00 : f32
    %31 = vector.broadcast %cst_17 : f32 to vector<8x128xf32>
    %32 = arith.addf %31, %30 : vector<8x128xf32>
    %cst_18 = arith.constant 4.000000e-01 : f32
    %33 = vector.broadcast %cst_18 : f32 to vector<8x128xf32>
    %34 = arith.mulf %33, %32 : vector<8x128xf32>
    %35 = vector.extract_strided_slice %21 {offsets = [0, 128], sizes = [8, 128], strides = [1, 1]} : vector<8x256xf32> to vector<8x128xf32>
    %36 = vector.broadcast %14 : vector<1x128xf32> to vector<8x128xf32>
    %37 = arith.mulf %6, %36 : vector<8x128xf32>
    %38 = arith.addf %35, %37 : vector<8x128xf32>
    %39 = vector.broadcast %17 : vector<1x128xf32> to vector<8x128xf32>
    %40 = arith.addf %38, %39 : vector<8x128xf32>
    %cst_19 = arith.constant 5.000000e-01 : f32
    %41 = vector.broadcast %cst_19 : f32 to vector<8x128xf32>
    %42 = arith.mulf %41, %40 : vector<8x128xf32>
    %43 = math.tanh %42 : vector<8x128xf32>
    %cst_20 = arith.constant 1.000000e+00 : f32
    %44 = vector.broadcast %cst_20 : f32 to vector<8x128xf32>
    %45 = arith.addf %44, %43 : vector<8x128xf32>
    %cst_21 = arith.constant 2.000000e-01 : f32
    %46 = vector.broadcast %cst_21 : f32 to vector<8x128xf32>
    %47 = arith.mulf %46, %45 : vector<8x128xf32>
    %48 = arith.mulf %34, %3 : vector<8x128xf32>
    %49 = arith.truncf %48 : vector<8x128xf32> to vector<8x128xbf16>
    %cst_22 = arith.constant dense<0.000000e+00> : vector<8x128xf32>
    %50 = tpu.matmul %49, %10, %cst_22 {dimension_numbers = #tpu.dot_dimension_numbers<[1], [0], [0], [1], [0, 0, 1, 1], [], []>} : vector<8x128xbf16>, vector<128x128xbf16>, vector<8x128xf32> -> vector<8x128xf32>
    %51 = vector.broadcast %15 : vector<1x128xf32> to vector<8x128xf32>
    %52 = arith.mulf %6, %51 : vector<8x128xf32>
    %53 = arith.addf %50, %52 : vector<8x128xf32>
    %54 = vector.broadcast %18 : vector<1x128xf32> to vector<8x128xf32>
    %55 = arith.addf %53, %54 : vector<8x128xf32>
    %56 = math.tanh %55 : vector<8x128xf32>
    %57 = vector.broadcast %19 : vector<1x128xf32> to vector<8x128xf32>
    %58 = arith.mulf %6, %57 : vector<8x128xf32>
    %59 = math.tanh %58 : vector<8x128xf32>
    %60 = arith.subf %56, %3 : vector<8x128xf32>
    %61 = arith.mulf %47, %60 : vector<8x128xf32>
    %62 = arith.mulf %59, %61 : vector<8x128xf32>
    %63 = arith.addf %3, %62 : vector<8x128xf32>
    %c0_23 = arith.constant 0 : index
    %c0_24 = arith.constant 0 : index
    %64 = vector.load %arg9[%c0_23, %c0_24] : memref<8x128xf32, #tpu.memory_space<vmem>>, vector<8x128xf32>
    tpu.vector_store %arg9[%c0_23, %c0_24], %63 {strides = array<i32>} : memref<8x128xf32, #tpu.memory_space<vmem>>, vector<8x128xf32>,
    %c1_i32 = arith.constant 1 : i32
    %65 = arith.cmpi eq, %arg1, %c1_i32 : i32
    %66 = arith.extui %65 : i1 to i32
    %c0_i32_25 = arith.constant 0 : i32
    %67 = arith.cmpi ne, %66, %c0_i32_25 : i32
    scf.if %67 {
      %c0_26 = arith.constant 0 : index
      %c0_27 = arith.constant 0 : index
      %68 = vector.load %arg8[%c0_26, %c0_27] : memref<8x128xf32, #tpu.memory_space<vmem>>, vector<8x128xf32>
      tpu.vector_store %arg8[%c0_26, %c0_27], %63 {strides = array<i32>} : memref<8x128xf32, #tpu.memory_space<vmem>>, vector<8x128xf32>,
    } else {
    }
    return
  }
  func.func @transform_0(%arg0: i32, %arg1: i32) -> (i32, i32) {
    %c0_i32 = arith.constant 0 : i32
    %c0_i32_0 = arith.constant 0 : i32
    return %arg0, %c0_i32 : i32, i32
  }
  func.func @transform_1(%arg0: i32, %arg1: i32) -> (i32, i32) {
    %c0_i32 = arith.constant 0 : i32
    %c0_i32_0 = arith.constant 0 : i32
    return %arg0, %c0_i32 : i32, i32
  }
  func.func @transform_2(%arg0: i32, %arg1: i32) -> (i32, i32) {
    %c0_i32 = arith.constant 0 : i32
    %c0_i32_0 = arith.constant 0 : i32
    %c0_i32_1 = arith.constant 0 : i32
    return %c0_i32, %c0_i32_0 : i32, i32
  }
  func.func @transform_3(%arg0: i32, %arg1: i32) -> (i32, i32, i32) {
    %c0_i32 = arith.constant 0 : i32
    %c0_i32_0 = arith.constant 0 : i32
    %c0_i32_1 = arith.constant 0 : i32
    return %arg1, %c0_i32, %c0_i32_0 : i32, i32, i32
  }
  func.func @transform_4(%arg0: i32, %arg1: i32) -> (i32, i32, i32) {
    %c0_i32 = arith.constant 0 : i32
    %c0_i32_0 = arith.constant 0 : i32
    %c0_i32_1 = arith.constant 0 : i32
    return %arg1, %c0_i32, %c0_i32_0 : i32, i32, i32
  }
  func.func @transform_5(%arg0: i32, %arg1: i32) -> (i32, i32, i32) {
    %c0_i32 = arith.constant 0 : i32
    %c0_i32_0 = arith.constant 0 : i32
    %c0_i32_1 = arith.constant 0 : i32
    return %arg1, %c0_i32, %c0_i32_0 : i32, i32, i32
  }
  func.func @transform_6(%arg0: i32, %arg1: i32) -> (i32, i32) {
    %c0_i32 = arith.constant 0 : i32
    %c0_i32_0 = arith.constant 0 : i32
    return %arg0, %c0_i32 : i32, i32
  }
}

</mosaic_0001>

<bundles_post_ra>
// kernel: gru_flow_forward.1
= control target key start
LH: loop header
LB: loop body
LE: loop exit
PB: predicated region body
PF: predicated region fallthrough
CT: control target
= control target key end

     0   :  { %s1045_s21 = smov 0   ;;  %s1047_s22 = smov 0   ;;  %s1150_s0 = inlined_call_operand.vmem [shape: f32[8,128], index: 0, kind: input, shape index: {}, may-alias: {0,6}]   ;;  %s1151_s1 = inlined_call_operand.vmem [shape: f32[8,4], index: 1, kind: input, shape index: {}]   ;;  %s1152_s2 = inlined_call_operand.vmem [shape: f32[4,128], index: 2, kind: input, shape index: {}]   ;;  %s1153_s3 = inlined_call_operand.vmem [shape: bf16[2,128,256], index: 3, kind: input, shape index: {}]   ;;  %s1154_s4 = inlined_call_operand.vmem [shape: bf16[2,128,128], index: 4, kind: input, shape index: {}]   ;;  %s1155_s5 = inlined_call_operand.vmem [shape: f32[2,8,128], index: 5, kind: input, shape index: {}]   ;;  %s1156_s6 = inlined_call_operand.vmem [shape: f32[8,128], index: 6, kind: output, shape index: {}, may-alias: {0,6}]  }
   0x1   :  { %s1049_s23 = smov 0  }
   0x2 LB: > { %s25_s24 = sadd.s32 1, %s1001_s22  ;;  %p841_p0 = scmp.ge.s32.totalorder %s1005_s23, 1  ;;  %s1005_s23 = sphi %s1049_s23, %s16_s23   ;;  %s1001_s22 = sphi %s1047_s22, %s1158_s22   ;;  %s997_s21 = sphi %s1045_s21, %s1157_s21  }
   0x3   : > { %p26_p1 = scmp.ge.s32.totalorder %s25_s24, 2  ;;  %p261_p2 = scmp.lt.s32.totalorder %s1005_s23, 3 }
   0x5   : > { %s1160_s24 = smov (%p26_p1, %s25_s24), 0  ;;  %p262_p3 = pnand %p841_p0, %p261_p2 }
   0x6   : > { %p315_p4 = scmp.lt.s32.totalorder (!%p262_p3), %s997_s21, 1  ;;  %p847_p5 = scmp.ne.s32.totalorder (!%p262_p3), %s997_s21, 0 }
   0x7   : > { %265 = sbr.rel (%p262_p3) target bundleno = 495 (0x1ef), region = 44 }
   0xc   : > { %s316_s25 = scalar_select %p315_p4, %s997_s21, 1 }
   0xd   : > { %337 = sbr.rel (%p847_p5) target bundleno = 20 (0x14), region = 48 }
   0xe   : > { %s878_s26 = sshll.u32 %s316_s25, 7  ;;  %s879_s27 = sshll.u32 %s316_s25, 6 }
   0xf   : > { %s1070_s30 = scalar_lea.vmem %s1153_s3, %s878_s26  ;;  %s1075_s9 = scalar_lea.vmem %s1154_s4, %s879_s27 }
  0x10   : > { %s846_s10 = sshll.u32 %s316_s25, 3 }
  0x11   : > { %s1080_s13 = scalar_lea.vmem %s1155_s5, %s846_s10 }
  0x12   : > { %v338_v0 = vld [vmem:[%s1150_s0] sm:$0xff] }
  0x13   : > { %339 = vst [vmem:[#allocation2] sm:$0xff] %v338_v0 }
  0x14 PF: > { %v943_v1 = vld [vmem:[%s1070_s30 + $0x74] ss:$8 sps:$4 sm:$0xff]   ;;  %v945_v2 = vld [vmem:[%s1070_s30 + $0x70] ss:$8 sps:$4 sm:$0xff]   ;;  %v1007_v3 = vmov 0.0   ;;  %vm1008_vm0 = vmmov 0   ;;  %v576_v33 = vlaneseq }
  0x15   : > { %891 = vmatprep.subr.mxu0 %v1007_v3  ;;  %535 = vmatprep.subr.bf16.mxu1 %v943_v1  ;;  %v946_v4 = vld [vmem:[%s1070_s30 + $0x64] ss:$8 sps:$4 sm:$0xff]   ;;  %v948_v5 = vld [vmem:[%s1070_s30 + $0x60] ss:$8 sps:$4 sm:$0xff]   ;;  %v1009_v6 = vmov 0   ;;  %vm347_vm1 = vcmask 1043456  }
  0x16   : > { %893 = vmatprep.mubr.msk.f32.mxu0 %vm1008_vm0, %v1007_v3  ;;  %536 = vmatpush1.bf16.msra.mxu1 %v945_v2  ;;  %v949_v7 = vld [vmem:[%s1070_s30 + $0x54] ss:$8 sps:$4 sm:$0xff]   ;;  %v951_v8 = vld [vmem:[%s1070_s30 + $0x50] ss:$8 sps:$4 sm:$0xff]   ;;  %v952_v9 = vld [vmem:[%s1070_s30 + $0x44] ss:$8 sps:$4 sm:$0xff]  }
  0x17   : > { %567 = vmatprep.mubr.bf16.mxu1 %v1009_v6  ;;  %537 = vmatprep.subr.bf16.mxu1 %v946_v4  ;;  %vm343_vm2 = vcmask 31744   ;;  %v342_v10 = vld [vmem:[%s1152_s2] sm:$0xf]  ;;  %v955_v13 = vld [vmem:[%s1070_s30 + $0x34] ss:$8 sps:$4 sm:$0xff]   ;;  %v969_v25 = vld [vmem:[%s1075_s9 + $0x28] sm:$0xff]  }
  0x18   : > { %v341_v11 = vld [vmem:[%s1151_s1] sm:$0xff]  ;;  %892 = vmatpush3.msk.msra.mxu0 %vm347_vm1, %v342_v10  ;;  %v957_v14 = vld [vmem:[%s1070_s30 + $0x30] ss:$8 sps:$4 sm:$0xff]   ;;  %v961_v17 = vld [vmem:[%s1070_s30 + $0x14] ss:$8 sps:$4 sm:$0xff]   ;;  %v577_v34 = vshrl.u32 %v576_v33, 7 }
  0x19   : > { %v954_v12 = vld [vmem:[%s1070_s30 + $0x40] ss:$8 sps:$4 sm:$0xff]   ;;  %894 = vmatmul.mubr.msk.f32.vlgmr.msra.gmra.mxu0 %vm343_vm2, %v341_v11  ;;  %896 = vmatprep.subr.bf16.mxu0 %v1007_v3  ;;  %v958_v15 = vld [vmem:[%s1070_s30 + $0x24] ss:$8 sps:$4 sm:$0xff]   ;;  %v963_v18 = vld [vmem:[%s1070_s30 + $0x10] ss:$8 sps:$4 sm:$0xff]  }
  0x1a   : > { %538 = vmatpush1.bf16.msra.mxu1 %v948_v5  ;;  %912 = vmatprep.mubr.msk.bf16.mxu0 %vm1008_vm0, %v1007_v3  ;;  %v960_v16 = vld [vmem:[%s1070_s30 + $0x20] ss:$8 sps:$4 sm:$0xff]   ;;  %v964_v19 = vld [vmem:[%s1070_s30 + $0x4] ss:$8 sps:$4 sm:$0xff]   ;;  %v967_v23 = vld [vmem:[%s1075_s9 + $0x38] sm:$0xff]   ;;  %v578_v35 = vsub.s32 0, %v577_v34 }
  0x1b   : > { %539 = vmatprep.subr.bf16.mxu1 %v949_v7  ;;  %v966_v20 = vld [vmem:[%s1070_s30] ss:$8 sps:$4 sm:$0xff]   ;;  %897 = vmatpush3.bf16.msra.mxu0 %v967_v23  ;;  %v968_v24 = vld [vmem:[%s1075_s9 + $0x30] sm:$0xff]   ;;  %v971_v27 = vld [vmem:[%s1075_s9 + $0x18] sm:$0xff]   ;;  %v593_v38 = vsub.s32 1, %v577_v34  ;;  %v584_v39 = vsub.s32 3, %v577_v34 }
  0x1c   : > { %v1114_v21 = vld [vmem:[#allocation2] sm:$0xff]  ;;  %898 = vmatprep.subr.bf16.mxu0 %v1007_v3  ;;  %v972_v28 = vld [vmem:[%s1075_s9 + $0x10] sm:$0xff]   ;;  %v973_v29 = vld [vmem:[%s1075_s9 + $0x8] sm:$0xff]   ;;  %v599_v57 = vsub.s32 4, %v577_v34  ;;  %v610_v60 = vsub.s32 2, %v577_v34  ;;  %v703_v63 = vsub.s32 5, %v577_v34 }
  0x1d   : > { %v454_v22 = vpack.c.bf16 %v1114_v21, %v1114_v21  ;;  %v970_v26 = vld [vmem:[%s1075_s9 + $0x20] sm:$0xff]   ;;  %v709_v0 = vsub.s32 6, %v577_v34  ;;  %p874_p6 = scmp.ne.s32.totalorder %s997_s21, 1 }
  0x1e   : > { %540 = vmatpush1.bf16.msra.mxu1 %v951_v8  ;;  %v974_v30 = vld [vmem:[%s1075_s9] sm:$0xff]  }
  0x1f   : > { %541 = vmatprep.subr.bf16.mxu1 %v952_v9  ;;  %899 = vmatpush3.bf16.msra.mxu0 %v968_v24  ;;  %v453_v36 = vld [vmem:[%s1080_s13] sm:$0xff] }
  0x20   : > { %900 = vmatprep.subr.bf16.mxu0 %v1007_v3  ;;  %v579_v37 = vrot.slane %v453_v36, %v578_v35  ;;  %v594_v41 = vrot.slane %v453_v36, %v593_v38  ;;  %v585_v42 = vrot.slane %v453_v36, %v584_v39  ;;  %v600_v58 = vrot.slane %v453_v36, %v599_v57 }
  0x21   : > { %v611_v62 = vrot.slane %v453_v36, %v610_v60  ;;  %v704_v2 = vrot.slane %v453_v36, %v703_v63  ;;  %v710_v4 = vrot.slane %v453_v36, %v709_v0 }
  0x22   : > { %542 = vmatpush1.bf16.msra.mxu1 %v954_v12 }
  0x23   : > { %543 = vmatprep.subr.bf16.mxu1 %v955_v13  ;;  %901 = vmatpush3.bf16.msra.mxu0 %v969_v25 }
  0x24   : > { %902 = vmatprep.subr.bf16.mxu0 %v1007_v3 }
  0x26   : > { %544 = vmatpush1.bf16.msra.mxu1 %v957_v14 }
  0x27   : > { %545 = vmatprep.subr.bf16.mxu1 %v958_v15  ;;  %903 = vmatpush3.bf16.msra.mxu0 %v970_v26 }
  0x28   : > { %904 = vmatprep.subr.bf16.mxu0 %v1007_v3 }
  0x2a   : > { %546 = vmatpush1.bf16.msra.mxu1 %v960_v16 }
  0x2b   : > { %547 = vmatprep.subr.bf16.mxu1 %v961_v17  ;;  %905 = vmatpush3.bf16.msra.mxu0 %v971_v27 }
  0x2c   : > { %906 = vmatprep.subr.bf16.mxu0 %v1007_v3 }
  0x2e   : > { %548 = vmatpush1.bf16.msra.mxu1 %v963_v18 }
  0x2f   : > { %549 = vmatprep.subr.bf16.mxu1 %v964_v19  ;;  %907 = vmatpush3.bf16.msra.mxu0 %v972_v28 }
  0x30   : > { %908 = vmatprep.subr.bf16.mxu0 %v1007_v3 }
  0x32   : > { %550 = vmatpush1.bf16.msra.mxu1 %v966_v20 }
  0x33   : > { %909 = vmatpush3.bf16.msra.mxu0 %v973_v29 }
  0x34   : > { %910 = vmatprep.subr.bf16.mxu0 %v1007_v3 }
  0x35   : > { %568 = vmatmul.mubr.bf16.vlgmr.msra.gmra.mxu1 %v454_v22 }
  0x37   : > { %911 = vmatpush3.bf16.msra.mxu0 %v974_v30 }
  0xd9   : > { %v417_v31 = vpop.f32.mrf.mxu0 }
  0xda   : > { %v580_v40 = vmul.f32 %v579_v37, %v417_v31  ;;  %v595_v45 = vmul.f32 %v594_v41, %v417_v31  ;;  %v612_v1 = vmul.f32 %v611_v62, %v417_v31  ;;  %v711_v9 = vmul.f32 %v710_v4, %v417_v31 }
  0xdb   : > { %v895_v32 = vpop.f32.mrf.mxu0 }
  0xf5   : > { %v569_v43 = vpop.f32.mrf.mxu1 }
  0xf6   : > { %v581_v44 = vadd.f32 %v580_v40, %v569_v43 }
  0xf7   : > { %v571_v46 = vpop.f32.mrf.mxu1 }
  0xf8   : > { %v586_v47 = vadd.f32 %v585_v42, %v581_v44  ;;  %v596_v48 = vadd.f32 %v595_v45, %v571_v46 }
  0xf9   : > { %v573_v49 = vpop.f32.mrf.mxu1 }
  0xfa   : > { %v587_v50 = vmul.f32 0.5, %v586_v47  ;;  %v601_v59 = vadd.f32 %v600_v58, %v596_v48 }
  0xfb   : > { %v574_v51 = vpop.f32.mrf.mxu1 }
  0xfc   : > { %975 = vtanh.f32 %v587_v50  ;;  %v602_v61 = vmul.f32 0.5, %v601_v59 }
  0xfe   : > { %977 = vtanh.f32 %v602_v61 }
 0x109   : > { %v976_v52 = vpop.eup %975 }
 0x10a   : > { %v589_v53 = vadd.f32 1.0, %v976_v52 }
 0x10b   : > { %v978_v11 = vpop.eup %977 }
 0x10c   : > { %v590_v54 = vmul.f32 0.4, %v589_v53  ;;  %v604_v12 = vadd.f32 1.0, %v978_v11 }
 0x10e   : > { %v606_v55 = vmul.f32 %v590_v54, %v1114_v21  ;;  %v605_v14 = vmul.f32 0.2, %v604_v12 }
 0x110   : > { %v607_v56 = vpack.c.bf16 %v606_v55, %v606_v55 }
 0x112   : > { %913 = vmatmul.mubr.bf16.vlgmr.msra.gmra.mxu0 %v607_v56 }
 0x1d2   : > { %v695_v3 = vpop.f32.mrf.mxu0 }
 0x1d3   : > { %v696_v5 = vadd.f32 %v695_v3, %v612_v1 }
 0x1d4   : > { %v914_v6 = vpop.f32.mrf.mxu0 }
 0x1d5   : > { %v705_v7 = vadd.f32 %v704_v2, %v696_v5 }
 0x1d6   : > { %v698_v8 = vpop.f32.mrf.mxu0 }
 0x1d7   : > { %979 = vtanh.f32 %v705_v7 }
 0x1d8   : > { %v915_v10 = vpop.f32.mrf.mxu0  ;;  %981 = vtanh.f32 %v711_v9 }
 0x1e4   : > { %v980_v13 = vpop.eup %979 }
 0x1e5   : > { %v713_v15 = vsub.f32 %v980_v13, %v1114_v21  ;;  %v982_v17 = vpop.eup %981 }
 0x1e7   : > { %v714_v16 = vmul.f32 %v713_v15, %v605_v14 }
 0x1e9   : > { %v715_v18 = vmul.f32 %v982_v17, %v714_v16  ;;  %721 = sbr.rel (%p874_p6) target bundleno = 495 (0x1ef), region = 52 }
 0x1eb   : > { %v716_v19 = vadd.f32 %v715_v18, %v1114_v21 }
 0x1ed   : > { %717 = vst [vmem:[#allocation2] sm:$0xff] %v716_v19 }
 0x1ee   : > { %722 = vst [vmem:[%s1156_s6] sm:$0xff] %v716_v19 }
 0x1ef PF: > { %s16_s23 = sadd.s32 1, %s1005_s23   ;;  %s1157_s21 = smov %s1001_s22 }
 0x1f0   : > { %p13_p7 = scmp.ge.s32.totalorder %s16_s23, 4   ;;  %s1158_s22 = smov %s1160_s24 }
 0x1f2   :  { %15 = sbr.rel (!%p13_p7) target bundleno = 2 (0x2), region = 94 }

</bundles_post_ra>
